<compile_context>
chip_gen: v7x
topology: tpu7x:2x2x1
jax: 0.10.0
libtpu: 0.0.40
codegen_flags: <defaults>
</compile_context>

<pallas_src>
import functools

import jax
import jax.numpy as jnp
from jax.experimental import pallas as pl
from jax.experimental.pallas import tpu as pltpu

DK_SRC_WID = "src_wid"


def _embed_resize_kernel(ids_ref, table_hbm, wt_ref, out_ref, buf, sem):
    """One grid step processes a tile of TN token ids.

    ids_ref   : [N_pad]      int32 ids (scalar-prefetch, SMEM)
    table_hbm : [V, E]       f32 embedding table, left in HBM (manual DMA gather)
    wt_ref    : [E, D]       f32 resize weight, pre-transposed, VMEM resident
    out_ref   : [TN, D]      f32 output tile
    buf       : [2, TN, E]   f32 double-buffered gather scratch
    sem       : DMA sem (2,) one per buffer slot
    """
    i = pl.program_id(0)
    nt = pl.num_programs(0)
    tn = out_ref.shape[0]

    def row_copy(tile_idx, r, slot):
        tok = ids_ref[tile_idx * tn + r]
        return pltpu.make_async_copy(
            table_hbm.at[pl.ds(tok, 1)],          # [1, E] row in HBM
            buf.at[slot, pl.ds(r, 1)],            # [1, E] row in VMEM scratch
            sem.at[slot],
        )

    def issue_gather(tile_idx, slot):
        @pl.loop(0, tn)
        def _(r):
            row_copy(tile_idx, r, slot).start()

    def wait_gather(tile_idx, slot):
        @pl.loop(0, tn)
        def _(r):
            row_copy(tile_idx, r, slot).wait()

    slot = jax.lax.rem(i, 2)

    # Prime the pipeline on the very first step.
    @pl.when(i == 0)
    def _():
        issue_gather(0, 0)

    # Prefetch next tile's rows into the other slot while we compute this one.
    @pl.when(i + 1 < nt)
    def _():
        issue_gather(i + 1, jax.lax.rem(i + 1, 2))

    # Wait for this tile's gathered rows, then do the resize matmul on the MXU.
    wait_gather(i, slot)
    emb = buf[slot]                                                  # [TN, E]
    out = jnp.dot(emb, wt_ref[...], preferred_element_type=jnp.float32)
    out_ref[...] = out.astype(out_ref.dtype)


@functools.partial(jax.jit, static_argnames=("tile_n",))
def embed_resize(ids_flat, table, weight, tile_n=256):
    """ids_flat: [N] int, table: [V, E] f32, weight: [D, E] f32 -> [N, D] f32."""
    n = ids_flat.shape[0]
    v, e = table.shape
    d = weight.shape[0]

    # TODO(synk): PyTorch nn.Embedding raises on out-of-range ids (and may have
    # padding_idx semantics); here ids are clamped into [0, V-1] instead.
    ids32 = jnp.clip(ids_flat.astype(jnp.int32), 0, v - 1)

    num_tiles = -(-n // tile_n)            # ceil-div
    n_pad = num_tiles * tile_n
    if n_pad != n:
        ids32 = jnp.pad(ids32, (0, n_pad - n))

    table_f32 = table.astype(jnp.float32)
    w_t = weight.astype(jnp.float32).T     # [E, D]

    # Scoped-VMEM budget: resident W^T (double-buffered by the pipeline),
    # double-buffered output tiles, and the gather scratch, plus margin.
    vmem_bytes = (2 * e * d + 2 * tile_n * d + 2 * tile_n * e) * 4 + (4 << 20)
    vmem_limit = int(min(max(vmem_bytes, 16 << 20), 64 << 20))

    out = pl.pallas_call(
        _embed_resize_kernel,
        out_shape=jax.ShapeDtypeStruct((n_pad, d), jnp.float32),
        grid_spec=pltpu.PrefetchScalarGridSpec(
            num_scalar_prefetch=1,                       # ids -> SMEM
            grid=(num_tiles,),
            in_specs=[
                pl.BlockSpec(memory_space=pl.ANY),       # table stays in HBM
                pl.BlockSpec((e, d), lambda i, ids: (0, 0)),   # W^T resident
            ],
            out_specs=pl.BlockSpec((tile_n, d), lambda i, ids: (i, 0)),
            scratch_shapes=[
                pltpu.VMEM((2, tile_n, e), jnp.float32),  # double-buffered gather
                pltpu.SemaphoreType.DMA((2,)),            # one DMA sem per slot
            ],
        ),
        compiler_params=pltpu.CompilerParams(
            dimension_semantics=("arbitrary",),
            vmem_limit_bytes=vmem_limit,
        ),
    )(ids32, table_f32, w_t)
    return out[:n]


class ResizeDictWrapperEmbeddingPallas:
    """JAX/Pallas equivalent of the PyTorch ResizeDictWrapperEmbedding."""

    def __init__(self, d_model, vocab_size, embed_d_model, key, tile_n=256):
        self.d_model = d_model
        self.embed_d_model = embed_d_model
        self.tile_n = tile_n
        k_table, k_resize = jax.random.split(key)
        # nn.Embedding default init ~ N(0, 1)
        self.table = jax.random.normal(
            k_table, (vocab_size, embed_d_model), dtype=jnp.float32)
        # nn.Linear(embed_d_model, d_model, bias=False): weight shape [d_model, embed_d_model]
        bound = 1.0 / (embed_d_model ** 0.5)
        self.resize_weight = jax.random.uniform(
            k_resize, (d_model, embed_d_model),
            minval=-bound, maxval=bound, dtype=jnp.float32)

    def __call__(self, data_dict):
        w_id = data_dict[DK_SRC_WID]                # [B, S] ints
        b, s = w_id.shape
        out = embed_resize(w_id.reshape(-1), self.table, self.resize_weight,
                           tile_n=self.tile_n)
        return out.reshape(b, s, self.d_model)


if __name__ == "__main__":
    key = jax.random.PRNGKey(0)
    k_ids, k_params = jax.random.split(key)

    # Small but lane-dense shapes (E, D multiples of 128; 2 token tiles so the
    # double-buffered gather path is actually exercised).
    B, S = 2, 64          # batch, sequence  -> N = 128 tokens
    V = 256               # vocab size of the wrapped embedding layer
    E = 128               # embed_layer.d_model
    D = 128               # wrapper d_model
    TILE_N = 64           # 2 grid steps

    ids = jax.random.randint(k_ids, (B, S), 0, V, dtype=jnp.int32)
    module = ResizeDictWrapperEmbeddingPallas(
        d_model=D, vocab_size=V, embed_d_model=E, key=k_params, tile_n=TILE_N)

    out = module({DK_SRC_WID: ids})
    out = jax.block_until_ready(out)

    # Reference check in plain JAX: table[ids] @ W^T
    ref = jnp.take(module.table, ids, axis=0) @ module.resize_weight.T
    assert out.shape == (B, S, D), out.shape
    assert jnp.allclose(out, ref, atol=1e-4, rtol=1e-4), "mismatch vs reference"

    print("KERNEL_OK")
</pallas_src>

<mosaic_0001>
module attributes {stable_mosaic.version = 11 : i64} {
  func.func @_embed_resize_kernel(%arg0: i32, %arg1: memref<128xi32, #tpu.memory_space<smem>>, %arg2: memref<256x128xf32, #tpu.memory_space<any>>, %arg3: memref<128x128xf32, #tpu.memory_space<vmem>>, %arg4: memref<64x128xf32, #tpu.memory_space<vmem>>, %arg5: memref<2x64x128xf32, #tpu.memory_space<vmem>>, %arg6: memref<2x!tpu.dma_semaphore, #tpu.memory_space<semaphore_mem>>) attributes {dimension_semantics = [#tpu.dimension_semantics<arbitrary>], iteration_bounds = array<i64: 2>, scalar_prefetch = 1 : i64, scratch_operands = 2 : i64, tpu.core_type = #tpu.core_type<tc>, window_params = [{}, {pipeline_mode = #tpu.pipeline_mode<synchronous>, transform_indices = @transform_1, window_bounds = array<i64: 128, 128>}, {transform_indices = @transform_2, window_bounds = array<i64: 64, 128>}]} {
    %c2_i32 = arith.constant 2 : i32
    %0 = arith.remsi %arg0, %c2_i32 : i32
    %c0_i32 = arith.constant 0 : i32
    %1 = arith.cmpi eq, %arg0, %c0_i32 : i32
    %2 = arith.extui %1 : i1 to i32
    %c0_i32_0 = arith.constant 0 : i32
    %3 = arith.cmpi ne, %2, %c0_i32_0 : i32
    scf.if %3 {
      %c0_i32_11 = arith.constant 0 : i32
      %c64_i32_12 = arith.constant 64 : i32
      %15 = arith.addi %c0_i32_11, %c64_i32_12 : i32
      %c1_i32_13 = arith.constant 1 : i32
      scf.for %arg7 = %c0_i32_11 to %15 step %c1_i32_13  : i32 {
        %c1_i32_15 = arith.constant 1 : i32
        %16 = arith.muli %arg7, %c1_i32_15 : i32
        %c0_i32_16 = arith.constant 0 : i32
        %17 = arith.addi %c0_i32_16, %16 : i32
        %c0_i32_17 = arith.constant 0 : i32
        %18 = arith.addi %c0_i32_17, %17 : i32
        %19 = arith.index_cast %18 : i32 to index
        %20 = memref.load %arg1[%19] : memref<128xi32, #tpu.memory_space<smem>>
        %c0_i32_18 = arith.constant 0 : i32
        %c0_i32_19 = arith.constant 0 : i32
        %c0_i32_20 = arith.constant 0 : i32
        %21 = tpu.memref_slice %arg2[%20, %c0_i32_20] : memref<256x128xf32, #tpu.memory_space<any>> -> memref<1x128xf32, #tpu.memory_space<any>>
        %c0_i32_21 = arith.constant 0 : i32
        %22 = tpu.memref_slice %arg5[%c0_i32_18, %17, %c0_i32_21] : memref<2x64x128xf32, #tpu.memory_space<vmem>> -> memref<1x1x128xf32, #tpu.memory_space<vmem>>
        %23 = tpu.memref_squeeze %22 : memref<1x1x128xf32, #tpu.memory_space<vmem>> -> memref<1x128xf32, #tpu.memory_space<vmem>>
        %24 = tpu.memref_slice %arg6[%c0_i32_19] : memref<2x!tpu.dma_semaphore, #tpu.memory_space<semaphore_mem>> -> memref<1x!tpu.dma_semaphore, #tpu.memory_space<semaphore_mem>>
        %25 = tpu.memref_squeeze %24 : memref<1x!tpu.dma_semaphore, #tpu.memory_space<semaphore_mem>> -> memref<!tpu.dma_semaphore, #tpu.memory_space<semaphore_mem>>
        tpu.enqueue_dma source(%21 : memref<1x128xf32, #tpu.memory_space<any>>) target(%23 : memref<1x128xf32, #tpu.memory_space<vmem>>) target_semaphore(%25 : memref<!tpu.dma_semaphore, #tpu.memory_space<semaphore_mem>>)
      }
      %c64_i32_14 = arith.constant 64 : i32
    } else {
    }
    %c1_i32 = arith.constant 1 : i32
    %4 = arith.addi %arg0, %c1_i32 : i32
    %c2_i32_1 = arith.constant 2 : i32
    %5 = arith.cmpi slt, %4, %c2_i32_1 : i32
    %6 = arith.extui %5 : i1 to i32
    %c0_i32_2 = arith.constant 0 : i32
    %7 = arith.cmpi ne, %6, %c0_i32_2 : i32
    scf.if %7 {
      %c1_i32_11 = arith.constant 1 : i32
      %15 = arith.addi %arg0, %c1_i32_11 : i32
      %c1_i32_12 = arith.constant 1 : i32
      %16 = arith.addi %arg0, %c1_i32_12 : i32
      %c2_i32_13 = arith.constant 2 : i32
      %17 = arith.remsi %16, %c2_i32_13 : i32
      %c0_i32_14 = arith.constant 0 : i32
      %c64_i32_15 = arith.constant 64 : i32
      %18 = arith.addi %c0_i32_14, %c64_i32_15 : i32
      %c1_i32_16 = arith.constant 1 : i32
      scf.for %arg7 = %c0_i32_14 to %18 step %c1_i32_16  : i32 {
        %c1_i32_18 = arith.constant 1 : i32
        %19 = arith.muli %arg7, %c1_i32_18 : i32
        %c0_i32_19 = arith.constant 0 : i32
        %20 = arith.addi %c0_i32_19, %19 : i32
        %c64_i32_20 = arith.constant 64 : i32
        %21 = arith.muli %15, %c64_i32_20 : i32
        %22 = arith.addi %21, %20 : i32
        %23 = arith.index_cast %22 : i32 to index
        %24 = memref.load %arg1[%23] : memref<128xi32, #tpu.memory_space<smem>>
        %c0_i32_21 = arith.constant 0 : i32
        %25 = tpu.memref_slice %arg2[%24, %c0_i32_21] : memref<256x128xf32, #tpu.memory_space<any>> -> memref<1x128xf32, #tpu.memory_space<any>>
        %c0_i32_22 = arith.constant 0 : i32
        %26 = tpu.memref_slice %arg5[%17, %20, %c0_i32_22] : memref<2x64x128xf32, #tpu.memory_space<vmem>> -> memref<1x1x128xf32, #tpu.memory_space<vmem>>
        %27 = tpu.memref_squeeze %26 : memref<1x1x128xf32, #tpu.memory_space<vmem>> -> memref<1x128xf32, #tpu.memory_space<vmem>>
        %28 = tpu.memref_slice %arg6[%17] : memref<2x!tpu.dma_semaphore, #tpu.memory_space<semaphore_mem>> -> memref<1x!tpu.dma_semaphore, #tpu.memory_space<semaphore_mem>>
        %29 = tpu.memref_squeeze %28 : memref<1x!tpu.dma_semaphore, #tpu.memory_space<semaphore_mem>> -> memref<!tpu.dma_semaphore, #tpu.memory_space<semaphore_mem>>
        tpu.enqueue_dma source(%25 : memref<1x128xf32, #tpu.memory_space<any>>) target(%27 : memref<1x128xf32, #tpu.memory_space<vmem>>) target_semaphore(%29 : memref<!tpu.dma_semaphore, #tpu.memory_space<semaphore_mem>>)
      }
      %c64_i32_17 = arith.constant 64 : i32
    } else {
    }
    %c0_i32_3 = arith.constant 0 : i32
    %c64_i32 = arith.constant 64 : i32
    %8 = arith.addi %c0_i32_3, %c64_i32 : i32
    %c1_i32_4 = arith.constant 1 : i32
    scf.for %arg7 = %c0_i32_3 to %8 step %c1_i32_4  : i32 {
      %c1_i32_11 = arith.constant 1 : i32
      %15 = arith.muli %arg7, %c1_i32_11 : i32
      %c0_i32_12 = arith.constant 0 : i32
      %16 = arith.addi %c0_i32_12, %15 : i32
      %c64_i32_13 = arith.constant 64 : i32
      %17 = arith.muli %arg0, %c64_i32_13 : i32
      %18 = arith.addi %17, %16 : i32
      %19 = arith.index_cast %18 : i32 to index
      %20 = memref.load %arg1[%19] : memref<128xi32, #tpu.memory_space<smem>>
      %c0_i32_14 = arith.constant 0 : i32
      %21 = tpu.memref_slice %arg2[%20, %c0_i32_14] : memref<256x128xf32, #tpu.memory_space<any>> -> memref<1x128xf32, #tpu.memory_space<any>>
      %c0_i32_15 = arith.constant 0 : i32
      %22 = tpu.memref_slice %arg5[%0, %16, %c0_i32_15] : memref<2x64x128xf32, #tpu.memory_space<vmem>> -> memref<1x1x128xf32, #tpu.memory_space<vmem>>
      %23 = tpu.memref_squeeze %22 : memref<1x1x128xf32, #tpu.memory_space<vmem>> -> memref<1x128xf32, #tpu.memory_space<vmem>>
      %24 = tpu.memref_slice %arg6[%0] : memref<2x!tpu.dma_semaphore, #tpu.memory_space<semaphore_mem>> -> memref<1x!tpu.dma_semaphore, #tpu.memory_space<semaphore_mem>>
      %25 = tpu.memref_squeeze %24 : memref<1x!tpu.dma_semaphore, #tpu.memory_space<semaphore_mem>> -> memref<!tpu.dma_semaphore, #tpu.memory_space<semaphore_mem>>
      tpu.wait_dma2 semaphore(%25 : memref<!tpu.dma_semaphore, #tpu.memory_space<semaphore_mem>>) src(%21 : memref<1x128xf32, #tpu.memory_space<any>>) dst(%23 : memref<1x128xf32, #tpu.memory_space<vmem>>)
    }
    %c64_i32_5 = arith.constant 64 : i32
    %9 = arith.index_cast %0 : i32 to index
    %c0 = arith.constant 0 : index
    %c0_6 = arith.constant 0 : index
    %10 = vector.load %arg5[%9, %c0, %c0_6] : memref<2x64x128xf32, #tpu.memory_space<vmem>>, vector<1x64x128xf32>
    %11 = vector.shape_cast %10 : vector<1x64x128xf32> to vector<64x128xf32>
    %c0_7 = arith.constant 0 : index
    %c0_8 = arith.constant 0 : index
    %12 = vector.load %arg3[%c0_7, %c0_8] : memref<128x128xf32, #tpu.memory_space<vmem>>, vector<128x128xf32>
    %cst = arith.constant dense<0.000000e+00> : vector<64x128xf32>
    %13 = tpu.matmul %11, %12, %cst {dimension_numbers = #tpu.dot_dimension_numbers<[1], [0], [0], [1], [0, 0, 1, 1], [], []>} : vector<64x128xf32>, vector<128x128xf32>, vector<64x128xf32> -> vector<64x128xf32>
    %c0_9 = arith.constant 0 : index
    %c0_10 = arith.constant 0 : index
    %14 = vector.load %arg4[%c0_9, %c0_10] : memref<64x128xf32, #tpu.memory_space<vmem>>, vector<64x128xf32>
    tpu.vector_store %arg4[%c0_9, %c0_10], %13 {strides = array<i32>} : memref<64x128xf32, #tpu.memory_space<vmem>>, vector<64x128xf32>,
    return
  }
  func.func @transform_1(%arg0: i32, %arg1: memref<128xi32, #tpu.memory_space<smem>>) -> (i32, i32) {
    %c0_i32 = arith.constant 0 : i32
    %c0_i32_0 = arith.constant 0 : i32
    %c0_i32_1 = arith.constant 0 : i32
    return %c0_i32, %c0_i32_0 : i32, i32
  }
  func.func @transform_2(%arg0: i32, %arg1: memref<128xi32, #tpu.memory_space<smem>>) -> (i32, i32) {
    %c0_i32 = arith.constant 0 : i32
    %c0_i32_0 = arith.constant 0 : i32
    return %arg0, %c0_i32 : i32, i32
  }
}

</mosaic_0001>

<bundles_post_ra>
// kernel: embed_resize.1
= control target key start
LH: loop header
LB: loop body
LE: loop exit
PB: predicated region body
PF: predicated region fallthrough
CT: control target
= control target key end

     0   :  { %s1031_s0 = inlined_call_operand.vmem [shape: s32[128], index: 0, kind: input, shape index: {}]   ;;  %s1032_s1 = inlined_call_operand.vmem [shape: f32[256,128], index: 1, kind: input, shape index: {}]   ;;  %s1033_s2 = inlined_call_operand.vmem [shape: f32[128,128], index: 2, kind: input, shape index: {}]   ;;  %s1034_s3 = inlined_call_operand.hbm [shape: f32[128,128], index: 3, kind: output, shape index: {}]  }
   0x1   :  { %s8_s14 = sshll.u32 %s1031_s0, 4  ;;  %s9_s14 = int_to_ptr.vmem [resolvable:$true] %s8_s14 }
   0x2   :  { %s713_s15 = scalar_lea.vmem %s9_s14, 16  ;;  %p718_p1 = scmp.lt.s32.totalorder %s9_s14, %s9_s14 }
   0x3   :  { %p714_p0 = scmp.ne.s32.totalorder %s9_s14, %s713_s15  ;;  %p719_p2 = scmp.lt.s32.totalorder %s713_s15, %s713_s15 }
   0x5   :  { %p720_p3 = por %p719_p2, %p718_p1 }
   0x7   :  { %p721_p4 = pnand %p720_p3, %p714_p0 }
   0x9   :  { %724 = shalt.err (!%p721_p4)  }
   0xa   :  { %s817_s16 = smov [#allocation5]  }
   0xb   :  { %11 = dma.vmem_to_smem %s9_s14, 16, %s817_s16, [#allocation4] }
   0xc   :  { %781 = dma.done.wait [#allocation4], 16 }
   0xd   :  { %782 = vsyncadd [#allocation4], 4294967280 }
   0xe   :  { %13 = sfence }
   0xf   :  { %14 = vsyncpa [#allocation7], 0 }
  0x10   :  { %16 = vsyncpa [#allocation7 + $0x1], 0  ;;  %s844_s17 = smov 0   ;;  %s846_s18 = smov 0  }
  0x11   :  { %s848_s0 = smov 0   ;;  %s850_s19 = smov 0  }
  0x12 LB: > { %s865_s20 = sadd.s32 4294967295, %s803_s19   ;;  %s510_s21 = sadd.s32 4294967294, %s803_s19   ;;  %s803_s19 = sphi %s850_s19, %s1040_s19   ;;  %s799_s0 = sphi %s848_s0, %s1039_s0   ;;  %s795_s18 = sphi %s846_s18, %s1038_s18   ;;  %s791_s17 = sphi %s844_s17, %s1037_s17  }
  0x13   : > { %s869_s22 = sadd.s32 1, %s803_s19   ;;  %s50_s23 = sadd.s32 1, %s799_s0 }
  0x14   : > { %s47_s24 = ssub.s32 %s803_s19, %s869_s22  ;;  %p60_p5 = scmp.ne.s32.totalorder %s799_s0, %s795_s18 }
  0x15   : > { %p48_p6 = scmp.eq.s32.totalorder %s47_s24, 0  ;;  %p61_p7 = scmp.eq.s32.totalorder %s865_s20, 1 }
  0x16   : > { %p66_p8 = scmp.ne.s32.totalorder %s795_s18, %s791_s17  ;;  %p67_p9 = scmp.eq.s32.totalorder %s510_s21, 1 }
  0x17   : > { %s880_s25 = scalar_select %p48_p6, %s799_s0, %s50_s23  }
  0x18   : > { %p882_p10 = por %p61_p7, %p60_p5  ;;  %p886_p11 = por %p67_p9, %p66_p8 }
  0x19   : > { %p512_p12 = scmp.ge.s32.totalorder %s803_s19, 1  ;;  %p88_p13 = scmp.lt.s32.totalorder %s803_s19, 3 }
  0x1b   : > { %p89_p0 = pnand %p512_p12, %p88_p13 }
  0x1c   : > { %s100_s28 = sand.u32 (!%p89_p0), 1, %s795_s18   ;;  %p104_p1 = scmp.lt.s32.totalorder (!%p89_p0), %s865_s20, 0 }
  0x1d   : > { %92 = sbr.rel (%p89_p0) target bundleno = 367 (0x16f), region = 24  ;;  %s513_s29 = sshll.u32 (!%p89_p0), %s100_s28, 6 }
  0x1e   : > { %s105_s30 = ssub.s32 (!%p89_p0), 0, %s865_s20  ;;  %s900_s7 = scalar_lea.vmem (!%p89_p0), [#allocation6], %s513_s29 }
  0x1f   : > { %s514_s4 = smin.u32 (!%p89_p0), %s865_s20, %s105_s30  ;;  %p515_p2 = scmp.ne.s32.totalorder (!%p89_p0), %s865_s20, 0 }
  0x20   : > { %s107_s5 = sand.u32 (!%p89_p0), 1, %s514_s4  }
  0x21   : > { %s108_s6 = ssub.s32 (!%p89_p0), 0, %s107_s5 }
  0x24   : > { %s1042_s6 = smov (!%p104_p1, %s108_s6), %s107_s5  ;;  %113 = sbr.rel (%p515_p2) target bundleno = 62 (0x3e), region = 28 }
  0x25   : > { %s805_s8 = smov (!%p515_p2), 0  }
  0x2b LB: >> { %s120_s9 = sld [smem:[#allocation5 + %s807_s8]]  ;;  %s122_s13 = scalar_lea.vmem [#allocation2], %s807_s8  ;;  %s807_s8 = sphi %s805_s8, %s119_s8  }
  0x31   : >> { %s121_s12 = scalar_lea.vmem %s1032_s1, %s120_s9 }
  0x32   : >> { %v140_v0 = vld [vmem:[%s121_s12] sm:$0x1] }
  0x33   : >> { %141 = vst [vmem:[%s122_s13] sm:$0x1] %v140_v0 }
  0x34   : >> { %166 = vsyncadd [#allocation3], 16  ;;  %s119_s8 = sadd.s32 1, %s807_s8  }
  0x35   : >> { %p116_p3 = scmp.ge.s32.totalorder %s119_s8, 64  }
  0x37   : > { %118 = sbr.rel (!%p116_p3) target bundleno = 43 (0x2b), region = 173 }
  0x3e PF: > { %s167_s14 = sadd.s32 1, %s865_s20 }
  0x3f   : > { %p516_p4 = scmp.ge.s32.totalorder %s167_s14, 2 }
  0x40   : > { %p172_p5 = scmp.lt.s32.totalorder (!%p516_p4), %s167_s14, 0  ;;  %s173_s15 = ssub.s32 (!%p516_p4), 0, %s167_s14 }
  0x41   : > { %171 = sbr.rel (%p516_p4) target bundleno = 95 (0x5f), region = 69  ;;  %s517_s16 = smin.u32 (!%p516_p4), %s173_s15, %s167_s14 }
  0x42   : > { %s175_s21 = sand.u32 (!%p516_p4), 1, %s517_s16   ;;  %s809_s24 = smov (!%p516_p4), 0  }
  0x43   : > { %s176_s23 = ssub.s32 (!%p516_p4), 0, %s175_s21 }
  0x48   : > { %s1044_s23 = smov (!%p172_p5, %s176_s23), %s175_s21 }
  0x49 LB: >> { %s528_s29 = sshll.u32 %s865_s20, 6  ;;  %s519_s5 = sshll.u32 %s1044_s23, 6  ;;  %s811_s24 = sphi %s809_s24, %s183_s24  }
  0x4a   : >> { %s529_s30 = sadd.s32 64, %s528_s29  ;;  %s189_s9 = sadd.s32 %s811_s24, %s519_s5 }
  0x4b   : >> { %s185_s4 = sadd.s32 %s811_s24, %s529_s30  ;;  %s190_s13 = scalar_lea.vmem [#allocation2], %s189_s9 }
  0x4c   : >> { %s186_s8 = sld [smem:[#allocation5 + %s185_s4]]  ;;  %s191_s14 = scalar_lea.sflag [#allocation3], %s1044_s23 }
  0x52   : >> { %s187_s12 = scalar_lea.vmem %s1032_s1, %s186_s8 }
  0x53   : >> { %v209_v1 = vld [vmem:[%s187_s12] sm:$0x1] }
  0x54   : >> { %210 = vst [vmem:[%s190_s13] sm:$0x1] %v209_v1 }
  0x55   : >> { %235 = vsyncadd %s191_s14, 16  ;;  %s183_s24 = sadd.s32 1, %s811_s24  }
  0x56   : >> { %p180_p6 = scmp.ge.s32.totalorder %s183_s24, 64  }
  0x58   : > { %182 = sbr.rel (!%p180_p6) target bundleno = 73 (0x49), region = 184 }
  0x5f PF: > { %s813_s15 = smov 0  }
  0x60 LB: >> { %s245_s16 = scalar_lea.sflag [#allocation3], %s1042_s6  ;;  %s815_s15 = sphi %s813_s15, %s241_s15  }
  0x61   : >> { %783 = dma.done.wait %s245_s16, 16 }
  0x62   : >> { %784 = vsyncadd %s245_s16, 4294967280  ;;  %s241_s15 = sadd.s32 1, %s815_s15  }
  0x63   : >> { %p238_p7 = scmp.ge.s32.totalorder %s241_s15, 64  }
  0x64   : > { %v259_v2 = vld [vmem:[%s1033_s2] sm:$0xff] (%p238_p7)  ;;  %v260_v3 = vld [vmem:[%s1033_s2 + $0x8] sm:$0xff] (%p238_p7)  ;;  %v261_v4 = vld [vmem:[%s1033_s2 + $0x10] sm:$0xff] (%p238_p7)  ;;  %s520_s5 = sshll.u32 (%p238_p7), %s1042_s6, 6  ;;  %s530_s29 = sshll.u32 (%p238_p7), %s865_s20, 10 }
  0x65   : > { %240 = sbr.rel (!%p238_p7) target bundleno = 96 (0x60), region = 195  ;;  %v599_v5 = vpack.c.bf16 (%p238_p7), %v260_v3, %v259_v2  ;;  %v262_v6 = vld [vmem:[%s1033_s2 + $0x18] sm:$0xff] (%p238_p7)  ;;  %v263_v8 = vld [vmem:[%s1033_s2 + $0x20] sm:$0xff] (%p238_p7)  ;;  %v264_v9 = vld [vmem:[%s1033_s2 + $0x28] sm:$0xff] (%p238_p7)  ;;  %s931_s6 = scalar_lea.vmem (%p238_p7), [#allocation2], %s520_s5 }
  0x66   : > { %v603_v7 = vpack.c.bf16 (%p238_p7), %v262_v6, %v261_v4  ;;  %v607_v10 = vpack.c.bf16 (%p238_p7), %v264_v9, %v263_v8  ;;  %v251_v11 = vld [vmem:[%s931_s6] sm:$0xff] (%p238_p7)  ;;  %v265_v13 = vld [vmem:[%s1033_s2 + $0x30] sm:$0xff] (%p238_p7)  ;;  %v266_v14 = vld [vmem:[%s1033_s2 + $0x38] sm:$0xff] (%p238_p7)  ;;  %s402_s24 = sshll.u32 (%p238_p7), %s900_s7, 4  ;;  %s980_s23 = scalar_lea.hbm (%p238_p7), %s1034_s3, %s530_s29  ;;  %s982_s24 = int_to_ptr.vmem [resolvable:$true] %s402_s24 }
  0x67   : > { %600 = vmatprep.subr.bf16.mxu0 (%p238_p7), %v599_v5  ;;  %631 = vmatprep.subr.bf16.mxu1 (%p238_p7), %v599_v5  ;;  %v255_v12 = vld [vmem:[%s931_s6 + $0x20] sm:$0xff] (%p238_p7)  ;;  %v611_v15 = vpack.c.bf16 (%p238_p7), %v266_v14, %v265_v13  ;;  %v268_v17 = vld [vmem:[%s1033_s2 + $0x48] sm:$0xff] (%p238_p7)  ;;  %v269_v19 = vld [vmem:[%s1033_s2 + $0x50] sm:$0xff] (%p238_p7)  ;;  %s990_s20 = scalar_lea.sflag (%p238_p7), [#allocation7], %s100_s28  ;;  %s725_s4 = scalar_lea.vmem (%p238_p7), %s982_s24, 1024 }
  0x68   : > { %602 = vmatpush3.bf16.msra.mxu0 (%p238_p7), %v599_v5  ;;  %639 = vmatpush3.bf16.msra.mxu1 (%p238_p7), %v599_v5  ;;  %v267_v16 = vld [vmem:[%s1033_s2 + $0x40] sm:$0xff] (%p238_p7)  ;;  %v270_v20 = vld [vmem:[%s1033_s2 + $0x58] sm:$0xff] (%p238_p7)  ;;  %v272_v23 = vld [vmem:[%s1033_s2 + $0x68] sm:$0xff] (%p238_p7)  ;;  %p726_p8 = scmp.ne.s32.totalorder (%p238_p7), %s982_s24, %s725_s4  ;;  %s818_s5 = smov (%p238_p7), [#allocation6]  }
  0x69   : > { %604 = vmatprep.subr.bf16.mxu0 (%p238_p7), %v603_v7  ;;  %632 = vmatprep.subr.bf16.mxu1 (%p238_p7), %v603_v7  ;;  %v615_v18 = vpack.c.bf16 (%p238_p7), %v268_v17, %v267_v16  ;;  %v619_v21 = vpack.c.bf16 (%p238_p7), %v270_v20, %v269_v19  ;;  %v271_v22 = vld [vmem:[%s1033_s2 + $0x60] sm:$0xff] (%p238_p7)  ;;  %v273_v25 = vld [vmem:[%s1033_s2 + $0x70] sm:$0xff] (%p238_p7)  ;;  %v274_v26 = vld [vmem:[%s1033_s2 + $0x78] sm:$0xff] (%p238_p7)  ;;  %s729_s8 = sshll.u32 (%p238_p7), %s818_s5, 4  ;;  %s730_s8 = int_to_ptr.vmem [resolvable:$false] %s729_s8 }
  0x6a   : > { %587 = vmatprep.mubr.f32.mxu0 (%p238_p7), %v251_v11  ;;  %593 = vmatprep.mubr.f32.mxu1 (%p238_p7), %v255_v12  ;;  %v623_v24 = vpack.c.bf16 (%p238_p7), %v272_v23, %v271_v22  ;;  %v627_v27 = vpack.c.bf16 (%p238_p7), %v274_v26, %v273_v25  ;;  %v252_v28 = vld [vmem:[%s931_s6 + $0x8] sm:$0xff] (%p238_p7)  ;;  %v253_v30 = vld [vmem:[%s931_s6 + $0x10] sm:$0xff] (%p238_p7)  ;;  %v254_v32 = vld [vmem:[%s931_s6 + $0x18] sm:$0xff] (%p238_p7)  ;;  %p727_p9 = pnand (%p238_p7), %p726_p8, %p882_p10  ;;  %s731_s9 = scalar_lea.vmem (%p238_p7), %s730_s8, 2048 }
  0x6b   : > { %v256_v29 = vld [vmem:[%s931_s6 + $0x28] sm:$0xff] (%p238_p7)  ;;  %v257_v31 = vld [vmem:[%s931_s6 + $0x30] sm:$0xff] (%p238_p7)  ;;  %v258_v33 = vld [vmem:[%s931_s6 + $0x38] sm:$0xff] (%p238_p7)  ;;  %p732_p13 = scmp.lt.s32.totalorder (%p238_p7), %s982_s24, %s730_s8  ;;  %p733_p0 = scmp.lt.s32.totalorder (%p238_p7), %s731_s9, %s725_s4 }
  0x6c   : > { %606 = vmatpush3.bf16.msra.mxu0 %v603_v7  ;;  %640 = vmatpush3.bf16.msra.mxu1 %v603_v7  ;;  %p728_p12 = pneg %p727_p9 }
  0x6d   : > { %608 = vmatprep.subr.bf16.mxu0 %v607_v10  ;;  %633 = vmatprep.subr.bf16.mxu1 %v607_v10  ;;  %p734_p1 = por %p733_p0, %p732_p13 }
  0x6f   : > { %p735_p2 = pnand %p734_p1, %p728_p12 }
  0x70   : > { %610 = vmatpush3.bf16.msra.mxu0 %v607_v10  ;;  %641 = vmatpush3.bf16.msra.mxu1 %v607_v10 }
  0x71   : > { %612 = vmatprep.subr.bf16.mxu0 %v611_v15  ;;  %634 = vmatprep.subr.bf16.mxu1 %v611_v15 }
  0x74   : > { %614 = vmatpush3.bf16.msra.mxu0 %v611_v15  ;;  %642 = vmatpush3.bf16.msra.mxu1 %v611_v15 }
  0x75   : > { %616 = vmatprep.subr.bf16.mxu0 %v615_v18  ;;  %635 = vmatprep.subr.bf16.mxu1 %v615_v18 }
  0x78   : > { %618 = vmatpush3.bf16.msra.mxu0 %v615_v18  ;;  %643 = vmatpush3.bf16.msra.mxu1 %v615_v18 }
  0x79   : > { %620 = vmatprep.subr.bf16.mxu0 %v619_v21  ;;  %636 = vmatprep.subr.bf16.mxu1 %v619_v21 }
  0x7c   : > { %622 = vmatpush3.bf16.msra.mxu0 %v619_v21  ;;  %644 = vmatpush3.bf16.msra.mxu1 %v619_v21 }
  0x7d   : > { %624 = vmatprep.subr.bf16.mxu0 %v623_v24  ;;  %637 = vmatprep.subr.bf16.mxu1 %v623_v24 }
  0x80   : > { %626 = vmatpush3.bf16.msra.mxu0 %v623_v24  ;;  %645 = vmatpush3.bf16.msra.mxu1 %v623_v24 }
  0x81   : > { %628 = vmatprep.subr.bf16.mxu0 %v627_v27  ;;  %638 = vmatprep.subr.bf16.mxu1 %v627_v27 }
  0x84   : > { %630 = vmatpush3.bf16.msra.mxu0 %v627_v27  ;;  %646 = vmatpush3.bf16.msra.mxu1 %v627_v27 }
  0x87   : > { %588 = vmatmul.mubr.f32.vlgmr.msra.gmra.mrb[0].mxu0 %v252_v28  ;;  %594 = vmatmul.mubr.f32.vlgmr.msra.gmra.mrb[0].mxu1 %v256_v29 }
  0x88   : > { %590 = vmatprep.mubr.f32.mxu0 %v253_v30  ;;  %596 = vmatprep.mubr.f32.mxu1 %v257_v31 }
  0x8b   : > { %591 = vmatmul.mubr.f32.gmra.mrb[2].mxu0 %v254_v32  ;;  %597 = vmatmul.mubr.f32.gmra.mrb[2].mxu1 %v258_v33 }
 0x15a   : > { %v589_v34 = vpop.f32.mrb[0].mxu0  ;;  %v595_v35 = vpop.f32.mrb[0].mxu1 }
 0x15b   : > { %381 = vst [vmem:[%s900_s7 + $0x8] sm:$0xff] %v589_v34  ;;  %385 = vst [vmem:[%s900_s7 + $0x28] sm:$0xff] %v595_v35  ;;  %v341_v36 = vpop.f32.mrb[1].mxu0  ;;  %v361_v37 = vpop.f32.mrb[1].mxu1 }
 0x15c   : > { %380 = vst [vmem:[%s900_s7] sm:$0xff] %v341_v36  ;;  %384 = vst [vmem:[%s900_s7 + $0x20] sm:$0xff] %v361_v37 }
 0x15e   : > { %v592_v38 = vpop.f32.mrb[2].mxu0  ;;  %v598_v39 = vpop.f32.mrb[2].mxu1 }
 0x15f   : > { %383 = vst [vmem:[%s900_s7 + $0x18] sm:$0xff] %v592_v38  ;;  %387 = vst [vmem:[%s900_s7 + $0x38] sm:$0xff] %v598_v39  ;;  %v351_v40 = vpop.f32.mrb[3].mxu0  ;;  %v371_v41 = vpop.f32.mrb[3].mxu1 }
 0x160   : > { %382 = vst [vmem:[%s900_s7 + $0x10] sm:$0xff] %v351_v40  ;;  %386 = vst [vmem:[%s900_s7 + $0x30] sm:$0xff] %v371_v41 }
 0x161   : > { %738 = shalt.err (!%p735_p2)
}
 0x162   : > { %s739_s28 = scalar_lea.hbm %s980_s23, 1024  ;;  %s743_s11 = scalar_lea.hbm %s1034_s3, 2048 }
 0x163   : > { %p740_p3 = scmp.ne.s32.totalorder %s980_s23, %s739_s28  ;;  %p744_p6 = scmp.lt.u32.totalorder %s980_s23, %s1034_s3 }
 0x164   : > { %p745_p7 = scmp.lt.u32.totalorder %s743_s11, %s739_s28  ;;  %p747_p9 = scmp.lt.u32.totalorder %s739_s28, %s980_s23 }
 0x165   : > { %p741_p4 = pnand %p740_p3, %p882_p10 }
 0x166   : > { %p746_p8 = por %p745_p7, %p744_p6 }
 0x167   : > { %p742_p5 = pneg %p741_p4 }
 0x168   : > { %p748_p12 = por %p747_p9, %p746_p8 }
 0x16a   : > { %p749_p13 = pnand %p748_p12, %p742_p5 }
 0x16c   : > { %752 = shalt.err (!%p749_p13)
}
 0x16d   : > { %s819_s14 = smov 128   ;;  %s820_s15 = smov 8  }
 0x16e   : > { %647 = dma.vmem_to_hbm [thread:$0]  (%p882_p10), %s982_s24, 1024, %s980_s23, %s990_s20, %s819_s14, %s819_s14, %s820_s15  }
 0x16f PF: > { %p653_p0 = scmp.ge.s32.totalorder %s803_s19, 2  ;;  %s417_s16 = sand.u32 1, %s791_s17  }
 0x170   : > { %s418_s21 = scalar_lea.sflag [#allocation7], %s417_s16 }
 0x171   : > { %p650_p1 = pnand %p653_p0, %p886_p11 }
 0x173   : > { %786 = dma.done.wait (!%p650_p1), %s418_s21, 1024  }
 0x174   : > { %788 = vsyncadd (!%p650_p1), %s418_s21, 4294966272  ;;  %p19_p2 = scmp.ge.s32.totalorder %s869_s22, 4   ;;  %s1037_s17 = smov %s795_s18 }
 0x175   : > { %s1038_s18 = smov %s799_s0  ;;  %s1039_s0 = smov %s880_s25 }
 0x176   : > { %s1040_s19 = smov %s869_s22  ;;  %21 = sbr.rel (!%p19_p2) target bundleno = 18 (0x12), region = 206 }
 0x17d   :  { %423 = vsyncpa [#allocation7], 1 }
 0x17e   :  { %425 = vsyncpa [#allocation7 + $0x1], 1 }
 0x17f   :  { %426 = vsyncmov [#allocation3] }
 0x182   :  { %s427_s19 = vpop.sfrf %426 }
 0x183   :  { %p526_p10 = scmp.ne.s32.totalorder %s427_s19, 0 }
 0x185   :  { %431 = shalt.err (%p526_p10)  }
 0x186   :  { %433 = vsyncmov [#allocation3 + $0x1] }
 0x189   :  { %s434_s26 = vpop.sfrf %433 }
 0x18a   :  { %p527_p11 = scmp.ne.s32.totalorder %s434_s26, 0 }
 0x18c   :  { %438 = shalt.err (%p527_p11)  }

</bundles_post_ra>
